<compile_context>
chip_gen: v5e
topology: v5e:2x2
jax: 0.10.0
libtpu: 0.0.40
codegen_flags: <defaults>
</compile_context>

<pallas_src>
import functools
import math

import jax
import jax.numpy as jnp
from jax.experimental import pallas as pl
from jax.experimental.pallas import tpu as pltpu


# ---------------------------------------------------------------------------
# Kernels
# ---------------------------------------------------------------------------

def _value_embed(x_ref, w_ref, b_ref):
    # value embedding x @ W + b on the MXU, f32 accumulation
    v = jnp.dot(x_ref[...], w_ref[...], preferred_element_type=jnp.float32)
    return v + b_ref[...]


def _mix_store(mix_ref, v, pe, o_ref):
    w0 = mix_ref[0, 0]
    w1 = mix_ref[0, 1]
    # learned mix in f32 (v5e VPU has no bf16), cast only at the store
    o_ref[...] = (w0 * v + w1 * pe).astype(o_ref.dtype)
    # TODO(synk): nn.Dropout is identity at inference; a training-mode kernel
    # would add pltpu.prng_seed / prng_random_bits based dropout here.


def _total_embedding_gen_pe_kernel(mix_ref, x_ref, w_ref, b_ref, o_ref, *, seq_axis):
    """Hot path: pe generated in-kernel (EUP) -- no [S, D] HBM stream.

    mix_ref : SMEM (1, 2)   -- linear_embedding_weight.weight  (w0, w1)
    x_ref   : VMEM (tS, F)  -- input rows of this tile
    w_ref   : VMEM (F, D)   -- value-embedding weight (transposed), grid-invariant
    b_ref   : VMEM (1, D)   -- value-embedding bias, grid-invariant
    o_ref   : VMEM (tS, D)  -- output rows
    """
    tS, D = o_ref.shape
    v = _value_embed(x_ref, w_ref, b_ref)

    # pe[p, 2i]   = sin(p * exp(-2i * ln(1e4) / D))
    # pe[p, 2i+1] = cos(same) = sin(same + pi/2)   -> one transcendental / element
    lane = jax.lax.broadcasted_iota(jnp.int32, (1, D), 1)
    parity = lane & 1
    inv_freq = jnp.exp((lane - parity).astype(jnp.float32)
                       * (-math.log(10000.0) / D))                   # (1, D)
    phase = parity.astype(jnp.float32) * (math.pi / 2.0)             # (1, D)
    row0 = pl.program_id(seq_axis) * tS
    pos = (row0 + jax.lax.broadcasted_iota(jnp.int32, (tS, 1), 0)).astype(jnp.float32)
    pe = jnp.sin(pos * inv_freq + phase)                             # (tS, D) f32

    _mix_store(mix_ref, v, pe, o_ref)


def _total_embedding_stream_pe_kernel(mix_ref, x_ref, w_ref, b_ref, pe_ref, o_ref):
    """Fallback path: pe streamed from HBM.  With the batch axis innermost the
    pe block index is unchanged across consecutive steps, so Pallas skips the
    re-fetch (pe is read once per sequence tile, not once per batch)."""
    v = _value_embed(x_ref, w_ref, b_ref)
    _mix_store(mix_ref, v, pe_ref[...].astype(jnp.float32), o_ref)


# ---------------------------------------------------------------------------
# Wrapper
# ---------------------------------------------------------------------------

def _round_up(n, m):
    return (n + m - 1) // m * m


def _choose_tile_s(S, F, D, out_dtype, tile_s):
    """Sequence tile: as large as reasonable (amortize per-step overhead) while
    keeping the per-step f32 working set modest (safe on v7x's 64 MiB VMEM)."""
    D_p = _round_up(D, 128)
    F_lane = _round_up(F, 128)
    out_b = jnp.dtype(out_dtype).itemsize
    # double-buffered x + out tiles plus ~4 f32 intermediates per element
    bytes_per_row = 2 * F_lane * 4 + 2 * D_p * out_b + 4 * D_p * 4
    cap = max(256, ((20 << 20) // bytes_per_row) // 8 * 8)
    if S <= min(tile_s, cap):
        return S                                   # full extent (always legal)
    return max(8, min(tile_s, cap) // 8 * 8)       # multiple of 8 sublanes


def _build_call(B, S, F, D, tS, out_dtype, *, generate_pe):
    num_s = pl.cdiv(S, tS)

    # Grid ordering:
    #  * generate_pe: put the longer axis first so the leading "parallel" axis
    #    has >= 2 steps whenever possible (v7x megacore sharding).
    #  * streaming pe: batch must be the inner axis so pe is not re-fetched
    #    per batch.
    seq_outer = (num_s >= B) or (not generate_pe)
    if seq_outer:
        grid = (num_s, B)
        seq_axis = 0
        bs_map = lambda s, b: (b, s, 0)    # x / out blocks
        s_map = lambda s, b: (s, 0)        # pe blocks (seq-tile only)
        c_map = lambda s, b: (0, 0)        # W / bias (grid-invariant)
    else:
        grid = (B, num_s)
        seq_axis = 1
        bs_map = lambda b, s: (b, s, 0)
        s_map = lambda b, s: (s, 0)
        c_map = lambda b, s: (0, 0)

    in_specs = [
        pl.BlockSpec(memory_space=pltpu.MemorySpace.SMEM),       # mix (1, 2)
        pl.BlockSpec((pl.Squeezed(), tS, F), bs_map),            # x tile
        pl.BlockSpec((F, D), c_map),                             # W (full)
        pl.BlockSpec((1, D), c_map),                             # bias
    ]
    if generate_pe:
        kernel = functools.partial(_total_embedding_gen_pe_kernel, seq_axis=seq_axis)
        dim_sem = ("parallel", "parallel")
    else:
        in_specs.append(pl.BlockSpec((tS, D), s_map))            # pe tile
        kernel = _total_embedding_stream_pe_kernel
        # inner (batch) axis "arbitrary": sequential revisits of the same pe
        # block are what let Pallas skip the re-fetch.
        dim_sem = ("parallel", "arbitrary")

    out_specs = pl.BlockSpec((pl.Squeezed(), tS, D), bs_map)

    # Explicit VMEM budget (sublane/lane padded), clamped to 32 MiB so it stays
    # safe on every generation (v7x: 64 MiB physical per TensorCore).
    tS_p = _round_up(tS, 8)
    D_p = _round_up(D, 128)
    F_lane = _round_up(F, 128)
    out_b = jnp.dtype(out_dtype).itemsize
    need = (
        2 * tS_p * F_lane * 4            # x tiles (F is lane-padded to 128)
        + 2 * tS_p * D_p * out_b         # output tiles
        + 4 * 8 * D_p * 4                # W + bias copies (tiny)
        + 4 * tS_p * D_p * 4             # f32 intermediates (v, pe, temps)
    )
    if not generate_pe:
        need += 2 * tS_p * D_p * 4       # streamed pe tiles
    vmem_limit = int(min(max(int(need * 1.25), 16 << 20), 32 << 20))

    return pl.pallas_call(
        kernel,
        out_shape=jax.ShapeDtypeStruct((B, S, D), out_dtype),
        grid_spec=pltpu.PrefetchScalarGridSpec(
            num_scalar_prefetch=0,
            grid=grid,
            in_specs=in_specs,
            out_specs=out_specs,
        ),
        compiler_params=pltpu.CompilerParams(
            dimension_semantics=dim_sem,
            vmem_limit_bytes=vmem_limit,
        ),
    )


_GEN_PE_OK = True   # flipped to False once if in-kernel sin/exp fails to lower


def total_embedding(x, w, b, mix_w, *, out_dtype=jnp.float32, tile_s=1024,
                    generate_pe=None):
    """x: [B,S,F], w: [F,D], b: [D], mix_w: [1,2] -> [B,S,D] (out_dtype).

    Matches TotalEmbedding.forward in eval mode (dropout = identity)."""
    global _GEN_PE_OK
    B, S, F = x.shape
    D = w.shape[1]
    b2 = b.reshape(1, D).astype(jnp.float32)
    mix2 = mix_w.astype(jnp.float32).reshape(1, 2)
    tS = _choose_tile_s(S, F, D, out_dtype, tile_s)

    want_gen = generate_pe if generate_pe is not None else _GEN_PE_OK
    if want_gen:
        try:
            call = _build_call(B, S, F, D, tS, out_dtype, generate_pe=True)
            return call(mix2, x, w, b2)
        except (NotImplementedError, pltpu.LoweringException):
            if generate_pe:          # explicitly requested -> surface the error
                raise
            _GEN_PE_OK = False       # remember; fall through to streaming path

    pe = make_positional_encoding(S, D).astype(jnp.float32)
    call = _build_call(B, S, F, D, tS, out_dtype, generate_pe=False)
    return call(mix2, x, w, b2, pe)


# ---------------------------------------------------------------------------
# Reference / parameter init (host side)
# ---------------------------------------------------------------------------

def make_positional_encoding(seq_len, d_model):
    """Matches PositionalEncoding.__init__ (sin on even, cos on odd dims)."""
    position = jnp.arange(seq_len, dtype=jnp.float32)[:, None]
    div_term = jnp.exp(jnp.arange(0, d_model, 2, dtype=jnp.float32)
                       * (-math.log(10000.0) / d_model))
    angles = position * div_term
    pe = jnp.zeros((seq_len, d_model), dtype=jnp.float32)
    pe = pe.at[:, 0::2].set(jnp.sin(angles))
    pe = pe.at[:, 1::2].set(jnp.cos(angles))
    return pe


def init_params(key, d_model, value_features, time_features):
    """Deterministic parameter init matching the module's __init__."""
    in_features = value_features + time_features
    gain = 1.0 / math.sqrt(in_features)                  # xavier gain
    bound = gain * math.sqrt(6.0 / (in_features + d_model))
    w_t = jax.random.uniform(key, (d_model, in_features),
                             minval=-bound, maxval=bound, dtype=jnp.float32)
    w = w_t.T                                            # stored as [F, D]
    b = jnp.zeros((d_model,), dtype=jnp.float32)
    mix_w = jnp.ones((1, 2), dtype=jnp.float32)          # .weight.data.fill_(1)
    return w, b, mix_w


def reference(x, w, b, pe, mix_w):
    v = jnp.einsum("bsf,fd->bsd", x, w, precision=jax.lax.Precision.HIGHEST) + b
    return mix_w[0, 0] * v + mix_w[0, 1] * pe[None, :, :]


# ---------------------------------------------------------------------------
# Demo / checks
# ---------------------------------------------------------------------------

if __name__ == "__main__":
    key = jax.random.PRNGKey(0)
    k_x, k_w = jax.random.split(key)
    value_features, time_features = 3, 1
    F = value_features + time_features

    def run_check(B, S, d_model, out_dtype, tile_s, atol, rtol,
                  mix=(1.0, 1.0), generate_pe=None):
        kx = jax.random.fold_in(k_x, B * 100000 + S * 1000 + d_model)
        x = jax.random.normal(kx, (B, S, F), dtype=jnp.float32)
        w, b, mix_w = init_params(k_w, d_model, value_features, time_features)
        mix_w = jnp.array([list(mix)], dtype=jnp.float32)
        out = jax.block_until_ready(
            total_embedding(x, w, b, mix_w, out_dtype=out_dtype, tile_s=tile_s,
                            generate_pe=generate_pe))
        ref = reference(x, w, b, make_positional_encoding(S, d_model), mix_w)
        assert out.shape == (B, S, d_model)
        assert out.dtype == jnp.dtype(out_dtype)
        ok = bool(jnp.allclose(out.astype(jnp.float32), ref, atol=atol, rtol=rtol))
        assert ok, f"mismatch B={B} S={S} D={d_model} dtype={out_dtype} gen={generate_pe}"

    # 1) module-parity f32 output, lane-dense D (single tile, batch-outer grid)
    run_check(2, 8, 128, jnp.float32, 1024, 1e-4, 1e-4)
    # 2) bf16 stores as an explicit inference opt-in
    run_check(2, 8, 128, jnp.bfloat16, 1024, 3e-2, 3e-2)
    # 3) d_model not a multiple of 128 (general full-extent-block path)
    run_check(2, 8, 32, jnp.float32, 1024, 1e-4, 1e-4)
    # 4) multi-tile sequence, sequence axis outer, non-trivial mix weights
    run_check(2, 32, 128, jnp.float32, 8, 1e-4, 1e-4, mix=(0.75, -0.5))
    # 5) multi-tile sequence, batch axis outer (num_s < B)
    run_check(4, 16, 128, jnp.float32, 8, 1e-4, 1e-4)
    # 6) streaming-pe fallback path exercised explicitly
    run_check(2, 32, 128, jnp.float32, 8, 1e-4, 1e-4, generate_pe=False)

    print("KERNEL_OK")
</pallas_src>

<mosaic_0001>
module attributes {stable_mosaic.version = 11 : i64} {
  func.func @_total_embedding_gen_pe_kernel(%arg0: i32, %arg1: i32, %arg2: memref<1x2xf32, #tpu.memory_space<smem>>, %arg3: memref<1x8x4xf32, #tpu.memory_space<vmem>>, %arg4: memref<4x128xf32, #tpu.memory_space<vmem>>, %arg5: memref<1x128xf32, #tpu.memory_space<vmem>>, %arg6: memref<1x8x128xf32, #tpu.memory_space<vmem>>) attributes {dimension_semantics = [#tpu.dimension_semantics<parallel>, #tpu.dimension_semantics<parallel>], iteration_bounds = array<i64: 2, 1>, scalar_prefetch = 0 : i64, scratch_operands = 0 : i64, tpu.core_type = #tpu.core_type<tc>, window_params = [{transform_indices = @transform_0, window_bounds = array<i64: 1, 2>}, {transform_indices = @transform_1, window_bounds = array<i64: 1, 8, 4>}, {pipeline_mode = #tpu.pipeline_mode<synchronous>, transform_indices = @transform_2, window_bounds = array<i64: 4, 128>}, {pipeline_mode = #tpu.pipeline_mode<synchronous>, transform_indices = @transform_3, window_bounds = array<i64: 1, 128>}, {transform_indices = @transform_4, window_bounds = array<i64: 1, 8, 128>}]} {
    %c0 = arith.constant 0 : index
    %c0_0 = arith.constant 0 : index
    %c0_1 = arith.constant 0 : index
    %0 = vector.load %arg3[%c0, %c0_0, %c0_1] : memref<1x8x4xf32, #tpu.memory_space<vmem>>, vector<1x8x4xf32>
    %1 = vector.shape_cast %0 : vector<1x8x4xf32> to vector<8x4xf32>
    %c0_2 = arith.constant 0 : index
    %c0_3 = arith.constant 0 : index
    %2 = vector.load %arg4[%c0_2, %c0_3] : memref<4x128xf32, #tpu.memory_space<vmem>>, vector<4x128xf32>
    %cst = arith.constant dense<0.000000e+00> : vector<8x128xf32>
    %3 = tpu.matmul %1, %2, %cst {dimension_numbers = #tpu.dot_dimension_numbers<[1], [0], [0], [1], [0, 0, 1, 1], [], []>} : vector<8x4xf32>, vector<4x128xf32>, vector<8x128xf32> -> vector<8x128xf32>
    %c0_4 = arith.constant 0 : index
    %c0_5 = arith.constant 0 : index
    %4 = vector.load %arg5[%c0_4, %c0_5] : memref<1x128xf32, #tpu.memory_space<vmem>>, vector<1x128xf32>
    %5 = vector.broadcast %4 : vector<1x128xf32> to vector<8x128xf32>
    %6 = arith.addf %3, %5 : vector<8x128xf32>
    %7 = tpu.iota {dimensions = array<i32: 1>} : vector<1x128xi32>
    %c1_i32 = arith.constant 1 : i32
    %8 = vector.broadcast %c1_i32 : i32 to vector<1x128xi32>
    %9 = arith.andi %7, %8 : vector<1x128xi32>
    %10 = arith.subi %7, %9 : vector<1x128xi32>
    %11 = arith.sitofp %10 : vector<1x128xi32> to vector<1x128xf32>
    %cst_6 = arith.constant -0.0719557852 : f32
    %12 = vector.broadcast %cst_6 : f32 to vector<1x128xf32>
    %13 = arith.mulf %11, %12 : vector<1x128xf32>
    %14 = math.exp %13 : vector<1x128xf32>
    %15 = arith.sitofp %9 : vector<1x128xi32> to vector<1x128xf32>
    %cst_7 = arith.constant 1.57079637 : f32
    %16 = vector.broadcast %cst_7 : f32 to vector<1x128xf32>
    %17 = arith.mulf %15, %16 : vector<1x128xf32>
    %c8_i32 = arith.constant 8 : i32
    %18 = arith.muli %arg1, %c8_i32 : i32
    %19 = tpu.iota {dimensions = array<i32: 0>} : vector<8x1xi32>
    %20 = vector.broadcast %18 : i32 to vector<8x1xi32>
    %21 = arith.addi %20, %19 : vector<8x1xi32>
    %22 = arith.sitofp %21 : vector<8x1xi32> to vector<8x1xf32>
    %23 = vector.broadcast %22 : vector<8x1xf32> to vector<8x128xf32>
    %24 = vector.broadcast %14 : vector<1x128xf32> to vector<8x128xf32>
    %25 = arith.mulf %23, %24 : vector<8x128xf32>
    %26 = vector.broadcast %17 : vector<1x128xf32> to vector<8x128xf32>
    %27 = arith.addf %25, %26 : vector<8x128xf32>
    %28 = math.sin %27 : vector<8x128xf32>
    %c0_8 = arith.constant 0 : index
    %c0_9 = arith.constant 0 : index
    %29 = memref.load %arg2[%c0_8, %c0_9] : memref<1x2xf32, #tpu.memory_space<smem>>
    %c0_10 = arith.constant 0 : index
    %c1 = arith.constant 1 : index
    %30 = memref.load %arg2[%c0_10, %c1] : memref<1x2xf32, #tpu.memory_space<smem>>
    %31 = vector.broadcast %29 : f32 to vector<8x128xf32>
    %32 = arith.mulf %31, %6 : vector<8x128xf32>
    %33 = vector.broadcast %30 : f32 to vector<8x128xf32>
    %34 = arith.mulf %33, %28 : vector<8x128xf32>
    %35 = arith.addf %32, %34 : vector<8x128xf32>
    %c0_11 = arith.constant 0 : index
    %c0_12 = arith.constant 0 : index
    %c0_13 = arith.constant 0 : index
    %36 = vector.load %arg6[%c0_11, %c0_12, %c0_13] : memref<1x8x128xf32, #tpu.memory_space<vmem>>, vector<1x8x128xf32>
    %37 = vector.shape_cast %36 : vector<1x8x128xf32> to vector<8x128xf32>
    %38 = vector.shape_cast %35 : vector<8x128xf32> to vector<1x8x128xf32>
    tpu.vector_store %arg6[%c0_11, %c0_12, %c0_13], %38 {strides = array<i32>} : memref<1x8x128xf32, #tpu.memory_space<vmem>>, vector<1x8x128xf32>,
    return
  }
  func.func @transform_0(%arg0: i32, %arg1: i32) -> (i32, i32) {
    %c0_i32 = arith.constant 0 : i32
    %c0_i32_0 = arith.constant 0 : i32
    %c0_i32_1 = arith.constant 0 : i32
    return %c0_i32, %c0_i32_0 : i32, i32
  }
  func.func @transform_1(%arg0: i32, %arg1: i32) -> (i32, i32, i32) {
    %c0_i32 = arith.constant 0 : i32
    %c0_i32_0 = arith.constant 0 : i32
    return %arg0, %arg1, %c0_i32 : i32, i32, i32
  }
  func.func @transform_2(%arg0: i32, %arg1: i32) -> (i32, i32) {
    %c0_i32 = arith.constant 0 : i32
    %c0_i32_0 = arith.constant 0 : i32
    %c0_i32_1 = arith.constant 0 : i32
    return %c0_i32, %c0_i32_0 : i32, i32
  }
  func.func @transform_3(%arg0: i32, %arg1: i32) -> (i32, i32) {
    %c0_i32 = arith.constant 0 : i32
    %c0_i32_0 = arith.constant 0 : i32
    %c0_i32_1 = arith.constant 0 : i32
    return %c0_i32, %c0_i32_0 : i32, i32
  }
  func.func @transform_4(%arg0: i32, %arg1: i32) -> (i32, i32, i32) {
    %c0_i32 = arith.constant 0 : i32
    %c0_i32_0 = arith.constant 0 : i32
    return %arg0, %arg1, %c0_i32 : i32, i32, i32
  }
}

</mosaic_0001>

<bundles_post_ra>
// kernel: tpu_custom_call.1
= control target key start
LH: loop header
LB: loop body
LE: loop exit
PB: predicated region body
PF: predicated region fallthrough
CT: control target
= control target key end

     0   :  { %9 = vsyncpa [#allocation4], 0  ;;  %s934_s0 = inlined_call_operand.vmem [shape: f32[1,2], index: 0, kind: input, shape index: {}]   ;;  %s935_s1 = inlined_call_operand.vmem [shape: f32[2,8,4], index: 1, kind: input, shape index: {}]   ;;  %s936_s2 = inlined_call_operand.vmem [shape: f32[4,128], index: 2, kind: input, shape index: {}]   ;;  %s937_s3 = inlined_call_operand.vmem [shape: f32[1,128], index: 3, kind: input, shape index: {}]   ;;  %s938_s4 = inlined_call_operand.hbm [shape: f32[2,8,128], index: 4, kind: output, shape index: {}]  }
   0x1   :  { %10 = vsyncpa [#allocation3], 0 }
   0x2   :  { %12 = vsyncpa [#allocation3 + $0x1], 0  ;;  %s774_s15 = smov 0   ;;  %s776_s16 = smov 0  }
   0x3   :  { %s778_s17 = smov 0   ;;  %s780_s18 = smov 0  }
   0x4   :  { %s782_s19 = smov 0   ;;  %s784_s20 = smov 0  }
   0x5 LB: > { %s547_s21 = sadd.s32 4294967295, %s739_s20   ;;  %s548_s22 = sadd.s32 4294967294, %s739_s20   ;;  %s739_s20 = sphi %s784_s20, %s18_s20   ;;  %s735_s19 = sphi %s782_s19, %s947_s19   ;;  %s731_s18 = sphi %s780_s18, %s946_s18   ;;  %s727_s17 = sphi %s778_s17, %s945_s17   ;;  %s723_s16 = sphi %s776_s16, %s944_s16   ;;  %s719_s15 = sphi %s774_s15, %s943_s15  }
   0x6   : > { %s30_s23 = sadd.s32 1, %s735_s19  ;;  %s130_s24 = sadd.s32 1, %s727_s17 }
   0x7   : > { %p32_p0 = scmp.ge.s32.totalorder %s30_s23, 2  ;;  %p140_p1 = scmp.ne.s32.totalorder %s727_s17, %s723_s16 }
   0x8   : > { %p141_p2 = scmp.eq.s32.totalorder %s547_s21, 1  ;;  %p146_p3 = scmp.ne.s32.totalorder %s723_s16, %s719_s15 }
   0x9   : > { %s949_s23 = smov (%p32_p0, %s30_s23), 0  ;;  %p147_p5 = scmp.eq.s32.totalorder %s548_s22, 1 }
   0xa   : > { %p814_p4 = por %p141_p2, %p140_p1  ;;  %s125_s26 = ssub.s32 %s735_s19, %s949_s23 }
   0xb   : > { %p549_p6 = scmp.ge.s32.totalorder %s739_s20, 1  ;;  %p128_p7 = scmp.eq.s32.totalorder %s125_s26, 0 }
   0xc   : > { %p821_p8 = por %p147_p5, %p146_p3  ;;  %p154_p9 = scmp.lt.s32.totalorder %s739_s20, 3 }
   0xd   : > { %s827_s28 = scalar_select %p128_p7, %s727_s17, %s130_s24  }
   0xe   : > { %p155_p10 = pnand %p549_p6, %p154_p9  ;;  %p580_p11 = scmp.eq.s32.totalorder %s547_s21, 0 }
   0xf   : > { %s166_s5 = sshll.u32 %s934_s0, 4  ;;  %s741_s6 = smov [#allocation2]   ;;  %s167_s5 = int_to_ptr.vmem [resolvable:$true] %s166_s5 }
  0x10   : > { %p572_p12 = pneg %p155_p10  ;;  %195 = sbr.rel (%p155_p10) target bundleno = 166 (0xa6), region = 36 }
  0x12   : > { %p573_p13 = pnand %p580_p11, %p572_p12 }
  0x14   : > { %575 = dma.vmem_to_smem (!%p573_p13), %s167_s5, 16, %s741_s6, [#allocation4]  }
  0x15   : > { %710 = dma.done.wait (%p580_p11), [#allocation4], 16  }
  0x16   : > { %712 = vsyncadd (%p580_p11), [#allocation4], 4294967280 }
  0x17   : > { %202 = sfence }
  0x18   : > { %v233_v0 = vld [vmem:[%s936_s2] sm:$0xf]  ;;  %vm242_vm0 = vcmask 1043456   ;;  %p225_p0 = scmp.lt.s32.totalorder %s731_s18, 1  ;;  %v266_v1 = vlaneseq  ;;  %vm238_vm1 = vcmask 31744   ;;  %s561_s14 = sld [smem:[#allocation2 + $0x1]] }
  0x19   : > { %556 = vmatpush.msk.msra.mxu0 %vm242_vm0, %v233_v0  ;;  %v742_v27 = vmov 683565275   ;;  %v743_v29 = vmov 2475754826   ;;  %v744_v31 = vmov 2131351028  }
  0x1a   : > { %s226_s9 = scalar_select %p225_p0, %s731_s18, 1  ;;  %v267_v2 = vand.u32 127, %v266_v1  ;;  %v278_v9 = vshrl.u32 %v266_v1, 7  ;;  %v745_v33 = vmov 2102212464  }
  0x1b   : > { %v746_v35 = vmov 920167782   ;;  %v747_v41 = vmov 1326507024   ;;  %s439_s21 = sld [smem:[#allocation2]]  ;;  %s222_s22 = sand.u32 1, %s723_s16  }
  0x1c   : > { %s555_s10 = sshll.u32 %s226_s9, 3  ;;  %v268_v3 = vand.u32 1, %v267_v2  ;;  %v281_v11 = vcvt.s32.f32 %v278_v9  ;;  %s554_s24 = sshll.u32 %s222_s22, 3 }
  0x1d   : > { %s231_s13 = scalar_lea.vmem %s935_s1, %s555_s10  ;;  %s563_s26 = sshll.u32 %s731_s18, 3 }
  0x1e   : > { %v232_v4 = vld [vmem:[%s231_s13] sm:$0xff]  ;;  %v269_v5 = vsub.s32 %v267_v2, %v268_v3  ;;  %v274_v10 = vcvt.s32.f32 %v268_v3  ;;  %s459_s7 = scalar_lea.hbm %s938_s4, %s563_s26  ;;  %s224_s8 = scalar_lea.vmem [#allocation5], %s554_s24 }
  0x1f   : > { %557 = vmatmul.msk.f32.vlgmr.msra.gmra.mxu0 %vm238_vm1, %v232_v4  ;;  %s461_s9 = sshll.u32 %s224_s8, 4  ;;  %s463_s10 = sshll.u32 %s459_s7, 4  ;;  %s462_s9 = int_to_ptr.vmem [resolvable:$true] %s461_s9  ;;  %s464_s10 = int_to_ptr.hbm [resolvable:$true] %s463_s10 }
  0x20   : > { %v270_v6 = vcvt.s32.f32 %v269_v5  ;;  %v275_v12 = vmul.f32 1.5707964, %v274_v10  ;;  %s448_s18 = scalar_lea.sflag [#allocation3], %s222_s22  ;;  %s671_s11 = sshra.s32 %s464_s10, 4  ;;  %s672_s11 = int_to_ptr.hbm [resolvable:$true] %s671_s11 }
  0x21   : > { %s673_s12 = scalar_lea.hbm %s672_s11, 8  ;;  %p678_p5 = scmp.lt.s32.totalorder %s672_s11, %s938_s4 }
  0x22   : > { %v271_v7 = vmul.f32 -0.071955785, %v270_v6  ;;  %p674_p1 = scmp.ne.s32.totalorder %s672_s11, %s673_s12 }
  0x24   : > { %v272_v8 = vmul.f32 1.442695, %v271_v7  ;;  %p675_p2 = pnand %p674_p1, %p814_p4 }
  0x26   : > { %640 = vpow2.f32 %v272_v8  ;;  %p676_p3 = pneg %p675_p2 }
  0x2c   : > { %v641_v13 = vpop.eup %640 }
  0x2d   : > { %v282_v14 = vmul.f32 %v641_v13, %v281_v11 }
  0x2f   : > { %v840_v15 = vadd.f32 %v282_v14, %v275_v12 }
  0x31   : > { %v287_v16 = vand.u32 2139095040, %v840_v15  ;;  %v284_v18 = vand.u32 2147483647, %v840_v15  ;;  %vm286_vm14 = vcmp.lt.s32.totalorder %v840_v15, 0 }
  0x33   : > { %v288_v17 = vshrl.u32 %v287_v16, 23  ;;  %v291_v21 = vand.u32 8388607, %v284_v18  ;;  %v748_v16 = vmov 0   ;;  %vm884_vm15 = vcmp.le.f32.partialorder %v284_v18, 0.7853982 }
  0x35   : > { %v558_v19 = vadd.s32 4294967169, %v288_v17  ;;  %v292_v24 = vor.u32 8388608, %v291_v21 }
  0x37   : > { %v294_v20 = vadd.s32 1, %v558_v19  ;;  %v849_v43 = vshll.u32 %v292_v24, 8 }
  0x39   : > { %vm295_vm2 = vcmp.gt.s32.totalorder %v294_v20, 0  ;;  %v333_v55 = vand.u32 65535, %v849_v43  ;;  %v334_v56 = vshrl.u32 %v849_v43, 16 }
  0x3a   : > { %v296_v22 = vsel %vm295_vm2, %v294_v20, 0 }
  0x3b   : > { %v298_v23 = vand.u32 31, %v296_v22  ;;  %v846_v25 = vshrl.u32 %v296_v22, 5 }
  0x3d   : > { %v299_v26 = vsub.s32 32, %v298_v23  ;;  %v301_v28 = vshll.u32 %v742_v27, %v298_v23  ;;  %v304_v30 = vshll.u32 %v743_v29, %v298_v23  ;;  %v307_v32 = vshll.u32 %v744_v31, %v298_v23 }
  0x3e   : > { %v310_v34 = vshll.u32 %v745_v33, %v298_v23  ;;  %v313_v36 = vshll.u32 %v746_v35, %v298_v23  ;;  %vm316_vm3 = vcmp.lt.s32.totalorder %v846_v25, 1  ;;  %vm319_vm4 = vcmp.lt.s32.totalorder %v846_v25, 4 }
  0x3f   : > { %v302_v37 = vshrl.u32 %v743_v29, %v299_v26  ;;  %v305_v38 = vshrl.u32 %v744_v31, %v299_v26  ;;  %v308_v39 = vshrl.u32 %v745_v33, %v299_v26  ;;  %v311_v40 = vshrl.u32 %v746_v35, %v299_v26 }
  0x40   : > { %v314_v42 = vshrl.u32 %v747_v41, %v299_v26  ;;  %vm318_vm5 = vcmp.lt.s32.totalorder %v846_v25, 3  ;;  %vm317_vm6 = vcmp.lt.s32.totalorder %v846_v25, 2  ;;  %v300_v63 = vshrl.u32 %v742_v27, %v299_v26 }
  0x41   : > { %v303_v44 = vor.u32 %v302_v37, %v301_v28  ;;  %v306_v45 = vor.u32 %v305_v38, %v304_v30  ;;  %v309_v46 = vor.u32 %v308_v39, %v307_v32  ;;  %v312_v47 = vor.u32 %v311_v40, %v310_v34 }
  0x42   : > { %v315_v48 = vor.u32 %v314_v42, %v313_v36 }
  0x43   : > { %v324_v49 = vsel %vm316_vm3, %v303_v44, %v306_v45  ;;  %v328_v50 = vsel %vm316_vm3, %v306_v45, %v309_v46  ;;  %v325_v51 = vsel %vm319_vm4, %v312_v47, 920167782  ;;  %v320_v12 = vsel %vm316_vm3, %v300_v63, %v303_v44 }
  0x44   : > { %v329_v52 = vsel %vm319_vm4, %v315_v48, 1326507024  ;;  %v326_v53 = vsel %vm318_vm5, %v309_v46, %v325_v51  ;;  %v321_v14 = vsel %vm319_vm4, %v309_v46, 2102212464  ;;  %vm427_vm3 = vweird.f32 %v840_v15 }
  0x45   : > { %v330_v54 = vsel %vm318_vm5, %v312_v47, %v329_v52  ;;  %v327_v57 = vsel %vm317_vm6, %v324_v49, %v326_v53  ;;  %v322_v27 = vsel %vm318_vm5, %v306_v45, %v321_v14 }
  0x46   : > { %v331_v58 = vsel %vm317_vm6, %v328_v50, %v330_v54  ;;  %v357_v61 = vand.u32 65535, %v327_v57  ;;  %v358_v62 = vshrl.u32 %v327_v57, 16  ;;  %v323_v35 = vsel %vm317_vm6, %v320_v12, %v322_v27 }
  0x47   : > { %v335_v59 = vand.u32 65535, %v331_v58  ;;  %v336_v60 = vshrl.u32 %v331_v58, 16  ;;  %v377_v39 = vmul.u32 %v849_v43, %v323_v35 }
  0x48   : > { %v359_v3 = vmul.u32 %v357_v61, %v333_v55  ;;  %v360_v4 = vmul.u32 %v358_v62, %v333_v55  ;;  %v361_v5 = vmul.u32 %v357_v61, %v334_v56  ;;  %v362_v9 = vmul.u32 %v358_v62, %v334_v56 }
  0x49   : > { %v337_v0 = vmul.u32 %v335_v59, %v333_v55  ;;  %v338_v1 = vmul.u32 %v336_v60, %v333_v55  ;;  %v339_v2 = vmul.u32 %v335_v59, %v334_v56  ;;  %v340_v6 = vmul.u32 %v336_v60, %v334_v56 }
  0x4a   : > { %v363_v10 = vshll.u32 %v360_v4, 16  ;;  %v365_v11 = vshll.u32 %v361_v5, 16  ;;  %v364_v24 = vshrl.u32 %v360_v4, 16  ;;  %v366_v31 = vshrl.u32 %v361_v5, 16 }
  0x4b   : > { %v341_v7 = vshll.u32 %v338_v1, 16  ;;  %v343_v8 = vshll.u32 %v339_v2, 16  ;;  %v342_v20 = vshrl.u32 %v338_v1, 16  ;;  %v344_v28 = vshrl.u32 %v339_v2, 16 }
  0x4c   : > { %vm367_vm8 = vc.u32 %v359_v3, %v363_v10  ;;  %v369_v19 = vadd.s32 %v363_v10, %v359_v3 }
  0x4d   : > { %vm345_vm7 = vc.u32 %v337_v0, %v341_v7  ;;  %v347_v13 = vadd.s32 %v341_v7, %v337_v0  ;;  %v368_v22 = vsel %vm367_vm8, 1, %v748_v16 }
  0x4e   : > { %v346_v17 = vsel %vm345_vm7, 1, %v748_v16  ;;  %v370_v26 = vadd.s32 %v368_v22, %v362_v9  ;;  %vm371_vm10 = vc.u32 %v369_v19, %v365_v11  ;;  %v373_v34 = vadd.s32 %v369_v19, %v365_v11 }
  0x4f   : > { %v348_v21 = vadd.s32 %v346_v17, %v340_v6  ;;  %vm349_vm9 = vc.u32 %v347_v13, %v343_v8  ;;  %v372_v30 = vsel %vm371_vm10, 1, %v748_v16 }
  0x50   : > { %v350_v23 = vsel %vm349_vm9, 1, %v748_v16  ;;  %v374_v32 = vadd.s32 %v372_v30, %v370_v26 }
  0x51   : > { %v352_v29 = vadd.s32 %v350_v23, %v348_v21 }
  0x52   : > { %v375_v36 = vadd.s32 %v374_v32, %v364_v24 }
  0x53   : > { %v353_v33 = vadd.s32 %v352_v29, %v342_v20  ;;  %v639_v29 = vld [vmem:[%s937_s3] ss:$0 sm:$0xff] }
  0x54   : > { %v376_v38 = vadd.s32 %v375_v36, %v366_v31  ;;  %v443_v31 = vstv %s561_s14 }
  0x55   : > { %v354_v37 = vadd.s32 %v353_v33, %v344_v28  ;;  %v441_v33 = vstv %s439_s21  ;;  %s677_s21 = scalar_lea.hbm %s938_s4, 16 }
  0x56   : > { %v380_v40 = vadd.s32 1, %v376_v38  ;;  %p679_p6 = scmp.lt.s32.totalorder %s677_s21, %s673_s12 }
  0x57   : > { %vm379_vm11 = vc.u32 %v354_v37, %v373_v34  ;;  %v378_v25 = vadd.s32 %v373_v34, %v354_v37 }
  0x58   : > { %v381_v41 = vsel %vm379_vm11, %v380_v40, %v376_v38  ;;  %p680_p7 = por %p679_p6, %p678_p5 }
  0x59   : > { %v382_v42 = vadd.s32 %v381_v41, %v377_v39 }
  0x5a   : > { %p681_p9 = pnand %p680_p7, %p676_p3 }
  0x5b   : > { %v383_v44 = vadd.s32 536870912, %v382_v42 }
  0x5d   : > { %v384_v45 = vshrl.u32 %v383_v44, 30 }
  0x5f   : > { %v385_v46 = vshll.u32 %v384_v45, 30  ;;  %v408_v4 = vsub.s32 4, %v384_v45 }
  0x61   : > { %v386_v47 = vsub.s32 %v382_v42, %v385_v46  ;;  %v409_v9 = vsel %vm286_vm14, %v408_v4, %v384_v45 }
  0x62   : > { %v411_v18 = vsel %vm884_vm15, 0, %v409_v9 }
  0x63   : > { %vm387_vm12 = vcmp.lt.s32.totalorder %v386_v47, 0  ;;  %v388_v48 = vsub.s32 0, %v386_v47  ;;  %v428_v17 = vadd.s32 3, %v411_v18 }
  0x65   : > { %v389_v49 = vsel %vm387_vm12, %v388_v48, %v386_v47  ;;  %v429_v22 = vand.u32 3, %v428_v17 }
  0x66   : > { %v390_v50 = vclz %v389_v49 }
  0x67   : > { %vm431_vm0 = vcmp.eq.s32.totalorder %v429_v22, 0  ;;  %vm434_vm1 = vcmp.eq.s32.totalorder %v429_v22, 2  ;;  %vm430_vm2 = vcmp.lt.s32.totalorder %v429_v22, 2 }
  0x68   : > { %v559_v51 = vadd.s32 4294967294, %v390_v50 }
  0x6a   : > { %vm560_vm13 = vcmp.lt.s32.totalorder %v559_v51, 0 }
  0x6b   : > { %v393_v52 = vsel %vm560_vm13, 0, %v559_v51 }
  0x6c   : > { %v394_v53 = vsub.s32 32, %v393_v52  ;;  %v395_v54 = vshll.u32 %v386_v47, %v393_v52  ;;  %v398_v55 = vsub.s32 4294967266, %v393_v52 }
  0x6e   : > { %v396_v43 = vshrl.u32 %v378_v25, %v394_v53  ;;  %v399_v56 = vadd.s32 127, %v398_v55 }
  0x70   : > { %v397_v57 = vor.u32 %v396_v43, %v395_v54  ;;  %v400_v58 = vshll.u32 %v399_v56, 23 }
  0x72   : > { %v401_v59 = vor.u32 4788187, %v400_v58  ;;  %v404_v60 = vcvt.s32.f32 %v397_v57 }
  0x74   : > { %v402_v61 = vand.u32 2147483647, %v401_v59 }
  0x76   : > { %v405_v62 = vmul.f32 %v404_v60, %v402_v61 }
  0x78   : > { %v406_v0 = vxor.u32 2147483648, %v405_v62 }
  0x7a   : > { %v407_v1 = vsel %vm286_vm14, %v406_v0, %v405_v62 }
  0x7b   : > { %v410_v2 = vsel %vm884_vm15, %v840_v15, %v407_v1 }
  0x7c   : > { %v412_v3 = vmul.f32 %v410_v2, %v410_v2 }
  0x7e   : > { %v413_v5 = vmul.f32 -0.001358992, %v412_v3  ;;  %v420_v6 = vmul.f32 -0.00019511016, %v412_v3 }
  0x80   : > { %v414_v7 = vadd.f32 0.041655596, %v413_v5  ;;  %v421_v8 = vadd.f32 0.008332121, %v420_v6 }
  0x82   : > { %v415_v10 = vmul.f32 %v414_v7, %v412_v3  ;;  %v422_v11 = vmul.f32 %v421_v8, %v412_v3 }
  0x84   : > { %v416_v12 = vadd.f32 -0.4999988, %v415_v10  ;;  %v423_v13 = vadd.f32 -0.16666654, %v422_v11 }
  0x86   : > { %v417_v14 = vmul.f32 %v416_v12, %v412_v3  ;;  %v424_v16 = vmul.f32 %v423_v13, %v412_v3 }
  0x88   : > { %v425_v19 = vadd.f32 1.0, %v424_v16  ;;  %v418_v20 = vadd.f32 1.0, %v417_v14 }
  0x8a   : > { %v426_v21 = vmul.f32 %v425_v19, %v410_v2  ;;  %v435_v24 = vxor.u32 2147483648, %v418_v20 }
  0x8c   : > { %v432_v23 = vxor.u32 2147483648, %v426_v21  ;;  %v436_v27 = vsel %vm434_vm1, %v435_v24, %v426_v21 }
  0x8e   : > { %v433_v26 = vsel %vm431_vm0, %v418_v20, %v432_v23 }
  0x8f   : > { %v437_v28 = vsel %vm430_vm2, %v433_v26, %v436_v27 }
  0x90   : > { %v438_v30 = vsel %vm427_vm3, nan, %v437_v28 }
  0x91   : > { %v444_v35 = vmul.f32 %v443_v31, %v438_v30 }
  0x9c   : > { %v263_v32 = vpop.f32.mrf.mxu0 }
  0x9d   : > { %v264_v34 = vadd.f32 %v639_v29, %v263_v32 }
  0x9f   : > { %v442_v15 = vmul.f32 %v441_v33, %v264_v34 }
  0xa1   : > { %v445_v36 = vadd.f32 %v444_v35, %v442_v15 }
  0xa3   : > { %446 = vst [vmem:[%s224_s8] sm:$0xff] %v445_v36 }
  0xa4   : > { %684 = shalt.err (!%p681_p9)
}
  0xa5   : > { %570 = dma.vmem_to_hbm [thread:$0]  (%p814_p4), %s462_s9, 128, %s464_s10, %s448_s18  }
  0xa6 PF: > { %p582_p10 = scmp.ge.s32.totalorder %s739_s20, 2  ;;  %s475_s22 = sand.u32 1, %s719_s15  }
  0xa7   : > { %s476_s29 = scalar_lea.sflag [#allocation3], %s475_s22 }
  0xa8   : > { %p577_p11 = pnand %p582_p10, %p821_p8 }
  0xaa   : > { %p578_p12 = pneg %p577_p11 }
  0xac   : > { %714 = dma.done.wait (%p578_p12), %s476_s29, 128  }
  0xad   : > { %716 = vsyncadd (%p578_p12), %s476_s29, 4294967168  ;;  %s18_s20 = sadd.s32 1, %s739_s20   ;;  %s943_s15 = smov %s723_s16 }
  0xae   : > { %p15_p13 = scmp.ge.s32.totalorder %s18_s20, 4   ;;  %s944_s16 = smov %s727_s17 }
  0xaf   : > { %s945_s17 = smov %s827_s28  ;;  %s946_s18 = smov %s735_s19 }
  0xb0   : > { %s947_s19 = smov %s949_s23  ;;  %17 = sbr.rel (!%p15_p13) target bundleno = 5 (0x5), region = 76 }
  0xb5   :  { %482 = vsyncpa [#allocation3], 1 }
  0xb6   :  { %484 = vsyncpa [#allocation3 + $0x1], 1 }
  0xb7   :  { %485 = vsyncpa [#allocation4], 1 }
  0xb8   :  { %487 = vsyncpa [#allocation4 + $0x1], 1 }

</bundles_post_ra>
